<compile_context>
chip_gen: v7x
topology: tpu7x:2x2x1
jax: 0.10.0
libtpu: 0.0.40
codegen_flags: <defaults>
</compile_context>

<pallas_src>
import jax
import jax.numpy as jnp
from jax.experimental import pallas as pl
from jax.experimental.pallas import tpu as pltpu


def _num_predictor_kernel(x_ref, w_ref, b_ref, out_ref):
    # x_ref:   (TILE_N, D)  input dtype
    # w_ref:   (D, 1)       input dtype (resident across grid steps)
    # b_ref:   (1, 1)       float32     (resident across grid steps)
    # out_ref: (TILE_N, 1)  input dtype
    y = jnp.dot(x_ref[...], w_ref[...], preferred_element_type=jnp.float32)
    y = y + b_ref[...]                       # broadcast (1,1) over (TILE_N,1)
    out_ref[...] = jnp.maximum(y, 0.0).astype(out_ref.dtype)


def num_predictor_forward(x: jax.Array, weight: jax.Array, bias: jax.Array,
                          *, tile_n: int = 512) -> jax.Array:
    """JAX/Pallas equivalent of NumPredictor(latent_dim).forward(x).

    x:      (N, latent_dim)
    weight: (1, latent_dim)   -- nn.Linear(latent_dim, 1).weight
    bias:   (1,)              -- nn.Linear(latent_dim, 1).bias
    returns (N, 1) in x.dtype
    """
    n, d = x.shape
    dtype = x.dtype

    # Sublane packing: 8 rows/vreg for 32-bit, 16 for bf16.
    base = 16 if dtype == jnp.bfloat16 else 8
    tile_n = max(base, (min(tile_n, pl.cdiv(n, base) * base) // base) * base)
    n_pad = pl.cdiv(n, tile_n) * tile_n

    x_p = x if n_pad == n else jnp.pad(x, ((0, n_pad - n), (0, 0)))
    w_col = weight.reshape(d, 1).astype(dtype)          # (D, 1)
    b = bias.reshape(1, 1).astype(jnp.float32)          # (1, 1)

    out = pl.pallas_call(
        _num_predictor_kernel,
        out_shape=jax.ShapeDtypeStruct((n_pad, 1), dtype),
        grid=(n_pad // tile_n,),
        in_specs=[
            pl.BlockSpec((tile_n, d), lambda i: (i, 0)),   # stream x rows
            pl.BlockSpec((d, 1), lambda i: (0, 0)),        # resident weight
            pl.BlockSpec((1, 1), lambda i: (0, 0)),        # resident bias
        ],
        out_specs=pl.BlockSpec((tile_n, 1), lambda i: (i, 0)),
        compiler_params=pltpu.CompilerParams(
            dimension_semantics=("parallel",),
        ),
    )(x_p, w_col, b)

    return out[:n]


def _reference(x, weight, bias):
    """Pure-JAX reference mirroring F.relu(nn.Linear(D, 1)(x))."""
    y = x.astype(jnp.float32) @ weight.astype(jnp.float32).T
    y = y + bias.astype(jnp.float32)
    return jnp.maximum(y, 0.0).astype(x.dtype)


if __name__ == "__main__":
    key = jax.random.PRNGKey(0)
    kx, kw, kb = jax.random.split(key, 3)

    num_node = 16
    latent_dim = 32

    # nn.Linear default init: U(-1/sqrt(D), 1/sqrt(D)) for weight and bias.
    bound = 1.0 / (latent_dim ** 0.5)
    x = jax.random.normal(kx, (num_node, latent_dim), dtype=jnp.float32)
    weight = jax.random.uniform(kw, (1, latent_dim), minval=-bound, maxval=bound,
                                dtype=jnp.float32)
    bias = jax.random.uniform(kb, (1,), minval=-bound, maxval=bound,
                              dtype=jnp.float32)

    out = num_predictor_forward(x, weight, bias)
    out = jax.block_until_ready(out)

    ref = _reference(x, weight, bias)
    assert out.shape == (num_node, 1)
    assert out.dtype == x.dtype
    assert jnp.allclose(out, ref, atol=1e-6), "mismatch vs reference"

    print("KERNEL_OK")
</pallas_src>

<mosaic_0001>
module attributes {stable_mosaic.version = 11 : i64} {
  func.func @_num_predictor_kernel(%arg0: i32, %arg1: memref<16x32xf32, #tpu.memory_space<vmem>>, %arg2: memref<32x1xf32, #tpu.memory_space<vmem>>, %arg3: memref<1x1xf32, #tpu.memory_space<vmem>>, %arg4: memref<16x1xf32, #tpu.memory_space<vmem>>) attributes {dimension_semantics = [#tpu.dimension_semantics<parallel>], iteration_bounds = array<i64: 1>, scalar_prefetch = 0 : i64, scratch_operands = 0 : i64, tpu.core_type = #tpu.core_type<tc>, window_params = [{transform_indices = @transform_0, window_bounds = array<i64: 16, 32>}, {pipeline_mode = #tpu.pipeline_mode<synchronous>, transform_indices = @transform_1, window_bounds = array<i64: 32, 1>}, {pipeline_mode = #tpu.pipeline_mode<synchronous>, transform_indices = @transform_2, window_bounds = array<i64: 1, 1>}, {transform_indices = @transform_3, window_bounds = array<i64: 16, 1>}]} {
    %c0 = arith.constant 0 : index
    %c0_0 = arith.constant 0 : index
    %0 = vector.load %arg1[%c0, %c0_0] : memref<16x32xf32, #tpu.memory_space<vmem>>, vector<16x32xf32>
    %c0_1 = arith.constant 0 : index
    %c0_2 = arith.constant 0 : index
    %1 = vector.load %arg2[%c0_1, %c0_2] : memref<32x1xf32, #tpu.memory_space<vmem>>, vector<32x1xf32>
    %cst = arith.constant dense<0.000000e+00> : vector<16x1xf32>
    %2 = tpu.matmul %0, %1, %cst {dimension_numbers = #tpu.dot_dimension_numbers<[1], [0], [0], [1], [0, 0, 1, 1], [], []>} : vector<16x32xf32>, vector<32x1xf32>, vector<16x1xf32> -> vector<16x1xf32>
    %c0_3 = arith.constant 0 : index
    %c0_4 = arith.constant 0 : index
    %3 = vector.load %arg3[%c0_3, %c0_4] : memref<1x1xf32, #tpu.memory_space<vmem>>, vector<1x1xf32>
    %4 = vector.broadcast %3 : vector<1x1xf32> to vector<16x1xf32>
    %5 = arith.addf %2, %4 : vector<16x1xf32>
    %cst_5 = arith.constant 0.000000e+00 : f32
    %6 = vector.broadcast %cst_5 : f32 to vector<16x1xf32>
    %7 = arith.maximumf %5, %6 : vector<16x1xf32>
    %c0_6 = arith.constant 0 : index
    %c0_7 = arith.constant 0 : index
    %8 = vector.load %arg4[%c0_6, %c0_7] : memref<16x1xf32, #tpu.memory_space<vmem>>, vector<16x1xf32>
    tpu.vector_store %arg4[%c0_6, %c0_7], %7 {strides = array<i32>} : memref<16x1xf32, #tpu.memory_space<vmem>>, vector<16x1xf32>,
    return
  }
  func.func @transform_0(%arg0: i32) -> (i32, i32) {
    %c0_i32 = arith.constant 0 : i32
    %c0_i32_0 = arith.constant 0 : i32
    return %arg0, %c0_i32 : i32, i32
  }
  func.func @transform_1(%arg0: i32) -> (i32, i32) {
    %c0_i32 = arith.constant 0 : i32
    %c0_i32_0 = arith.constant 0 : i32
    %c0_i32_1 = arith.constant 0 : i32
    return %c0_i32, %c0_i32_0 : i32, i32
  }
  func.func @transform_2(%arg0: i32) -> (i32, i32) {
    %c0_i32 = arith.constant 0 : i32
    %c0_i32_0 = arith.constant 0 : i32
    %c0_i32_1 = arith.constant 0 : i32
    return %c0_i32, %c0_i32_0 : i32, i32
  }
  func.func @transform_3(%arg0: i32) -> (i32, i32) {
    %c0_i32 = arith.constant 0 : i32
    %c0_i32_0 = arith.constant 0 : i32
    return %arg0, %c0_i32 : i32, i32
  }
}

</mosaic_0001>

<bundles_post_ra>
// kernel: tpu_custom_call.1
= control target key start
LH: loop header
LB: loop body
LE: loop exit
PB: predicated region body
PF: predicated region fallthrough
CT: control target
= control target key end

     0   :  { %vm29_vm0 = vcmask 261120   ;;  %vm113_vm1 = vcmask 7168   ;;  %s197_s1 = inlined_call_operand.vmem [shape: f32[32,1], index: 1, kind: input, shape index: {}]   ;;  %s198_s0 = inlined_call_operand.vmem [shape: f32[16,32], index: 0, kind: input, shape index: {}]   ;;  %s199_s2 = inlined_call_operand.<no memory space> [shape: f32[1,1], index: 2, kind: input, shape index: {}]   ;;  %s200_s3 = inlined_call_operand.vmem [shape: f32[16,1], index: 3, kind: output, shape index: {}]  }
   0x1   :  { %v18_v0 = vld [vmem:[%s197_s1] sm:$0xff]  ;;  %v19_v1 = vld [vmem:[%s197_s1 + $0x8] sm:$0xff]  ;;  %v20_v2 = vld [vmem:[%s197_s1 + $0x10] sm:$0xff]  ;;  %v8_v3 = vstv %s199_s2 }
   0x2   :  { %v140_v4 = vpack.c.bf16 %v19_v1, %v18_v0  ;;  %v21_v5 = vld [vmem:[%s197_s1 + $0x18] sm:$0xff]  ;;  %v16_v6 = vld [vmem:[%s198_s0] sm:$0xff]  ;;  %9 = vst [vmem:[#allocation2] sm:$0x1] %v8_v3  ;;  %v17_v8 = vld [vmem:[%s198_s0 + $0x8] sm:$0xff] }
   0x3   :  { %v144_v7 = vpack.c.bf16 %v21_v5, %v20_v2  ;;  %137 = vmatprep.mubr.msk.f32.mxu0 %vm29_vm0, %v16_v6 }
   0x4   :  { %141 = vmatprep.subr.bf16.mxu0 %v140_v4 }
   0x5   :  { %143 = vmatpush3.bf16.msra.mxu0 %v140_v4 }
   0x6   :  { %145 = vmatprep.subr.bf16.mxu0 %v144_v7 }
   0x9   :  { %147 = vmatpush3.bf16.msra.mxu0 %v144_v7  ;;  %v120_v9 = vld [vmem:[#allocation2] ss:$0 sm:$0xff] }
   0xc   :  { %138 = vmatmul.mubr.msk.f32.vlgmr.msra.gmra.mrb[0].mxu0 %vm29_vm0, %v17_v8 }
  0xdf   :  { %v139_v10 = vpop.f32.mrb[0].mxu0 }
  0xe0   :  { %v108_v11 = vadd.f32 %v139_v10, %v120_v9  ;;  %v102_v12 = vpop.f32.mrb[1].mxu0 }
  0xe1   :  { %v103_v13 = vadd.f32 %v120_v9, %v102_v12 }
  0xe2   :  { %v112_v14 = vmax.f32 %v108_v11, 0.0 }
  0xe3   :  { %v111_v15 = vmax.f32 %v103_v13, 0.0 }
  0xe4   :  { %115 = vst.msk [vmem:[%s200_s3 + $0x8] sm:$0xff] %vm113_vm1, %v112_v14 }
  0xe5   :  { %114 = vst.msk [vmem:[%s200_s3] sm:$0xff] %vm113_vm1, %v111_v15 }

</bundles_post_ra>
